<compile_context>
chip_gen: v7x
topology: tpu7x:2x2x1
jax: 0.10.0
libtpu: 0.0.40
codegen_flags: <defaults>
</compile_context>

<pallas_src>
import functools

import jax
import jax.numpy as jnp
from jax import lax
from jax.experimental import pallas as pl
from jax.experimental.pallas import tpu as pltpu

EPS = 1e-5  # PyTorch InstanceNorm2d default eps


def _resblock_kernel(x_ref, w1_ref, g1_ref, b1_ref, w2_ref, g2_ref, b2_ref,
                     out_ref, *, N, H, W, C):
    """Fused ResidualBlock for the whole (small) batch, lane-dense (C, H*W) layout.

    x_ref   : (N, C, H*W)  input (also the residual source), spatial flattened on lanes
    w*_ref  : (C, 9*C)     conv weights, column (ky*3+kx)*C + ci == w[:, ci, ky, kx]
    g*/b*   : (C, 1)       InstanceNorm affine params
    out_ref : (N, C, H*W)
    """
    HW = H * W

    # Edge masks for the zero-padded 3x3 taps, built once per invocation (VPU, no DMA).
    lane = lax.broadcasted_iota(jnp.int32, (1, HW), 1)
    col = lane % W
    m_left = (col != 0).astype(jnp.float32)            # kills dx == -1 taps at x == 0
    m_right = (col != W - 1).astype(jnp.float32)       # kills dx == +1 taps at x == W-1
    m_top = (lane >= W).astype(jnp.float32)            # kills dy == -1 taps at y == 0
    m_bot = (lane < (H - 1) * W).astype(jnp.float32)   # kills dy == +1 taps at y == H-1

    w1 = w1_ref[...]
    w2 = w2_ref[...]
    g1 = g1_ref[...]
    b1 = b1_ref[...]
    g2 = g2_ref[...]
    b2 = b2_ref[...]
    inv_hw = 1.0 / float(HW)

    def im2col(inp):
        # 9 lane-rotated, edge-masked tap windows stacked along sublanes -> (9*C, HW).
        wins = []
        for dy in (-1, 0, 1):
            for dx in (-1, 0, 1):
                off = dy * W + dx                       # static flat offset of this tap
                win = pltpu.roll(inp, (-off) % HW, 1) if off != 0 else inp
                if dy == -1:
                    win = win * m_top
                elif dy == 1:
                    win = win * m_bot
                if dx == -1:
                    win = win * m_left
                elif dx == 1:
                    win = win * m_right
                wins.append(win)
        return jnp.concatenate(wins, axis=0)            # (9*C, HW)

    def conv3x3_instnorm(inp, w, g, b):
        cols = im2col(inp)
        # Single MXU matmul per conv stage: (C, 9*C) @ (9*C, HW) -> (C, HW), f32 accumulate.
        acc = jnp.dot(w, cols, preferred_element_type=jnp.float32)
        # InstanceNorm2d: per-channel mean / biased variance over the lane (spatial) axis.
        mu = jnp.sum(acc, axis=1, keepdims=True) * inv_hw
        d = acc - mu
        var = jnp.sum(d * d, axis=1, keepdims=True) * inv_hw
        return d * lax.rsqrt(var + EPS) * g + b

    for n in range(N):                                  # N static & tiny -> unrolled
        x = x_ref[n]                                    # (C, HW)
        h = jnp.maximum(conv3x3_instnorm(x, w1, g1, b1), 0.0)
        h = conv3x3_instnorm(h, w2, g2, b2)
        out_ref[n] = (x + h).astype(out_ref.dtype)      # residual add


def residual_block(x_nchw, params):
    """Pallas implementation of ResidualBlock.forward (dim_in == dim_out).

    params: (w1, g1, b1, w2, g2, b2) with conv weights in PyTorch OIHW (C, C, 3, 3),
            gamma/beta shaped (C,).
    """
    w1, g1, b1, w2, g2, b2 = params
    N, C, H, W = x_nchw.shape
    HW = H * W

    # Lane-dense activations: pure reshape (NCHW with H*W flattened); no transpose, no pad.
    x = x_nchw.reshape(N, C, HW).astype(jnp.float32)

    def prep_w(w_oihw):
        # (O, I, ky, kx) -> (O, ky, kx, I) -> (O, 9*I); column (ky*3+kx)*C + ci.
        return jnp.transpose(w_oihw, (0, 2, 3, 1)).reshape(C, 9 * C).astype(jnp.float32)

    w1r, w2r = prep_w(w1), prep_w(w2)
    g1r = g1.reshape(C, 1).astype(jnp.float32)
    b1r = b1.reshape(C, 1).astype(jnp.float32)
    g2r = g2.reshape(C, 1).astype(jnp.float32)
    b2r = b2.reshape(C, 1).astype(jnp.float32)

    kernel = functools.partial(_resblock_kernel, N=N, H=H, W=W, C=C)

    out = pl.pallas_call(
        kernel,
        out_shape=jax.ShapeDtypeStruct((N, C, HW), jnp.float32),
        grid_spec=pltpu.PrefetchScalarGridSpec(
            num_scalar_prefetch=0,
            grid=(1,),                                       # one invocation: batch folded in
            in_specs=[
                pl.BlockSpec((N, C, HW), lambda i: (0, 0, 0)),   # x (also the residual)
                pl.BlockSpec((C, 9 * C), lambda i: (0, 0)),      # w1
                pl.BlockSpec((C, 1), lambda i: (0, 0)),          # gamma1
                pl.BlockSpec((C, 1), lambda i: (0, 0)),          # beta1
                pl.BlockSpec((C, 9 * C), lambda i: (0, 0)),      # w2
                pl.BlockSpec((C, 1), lambda i: (0, 0)),          # gamma2
                pl.BlockSpec((C, 1), lambda i: (0, 0)),          # beta2
            ],
            out_specs=pl.BlockSpec((N, C, HW), lambda i: (0, 0, 0)),
        ),
        compiler_params=pltpu.CompilerParams(
            dimension_semantics=("arbitrary",)),
    )(x, w1r, g1r, b1r, w2r, g2r, b2r)

    return out.reshape(N, C, H, W)


def _reference(x_nchw, params):
    """Plain-JAX reference reproducing the PyTorch forward pass."""
    w1, g1, b1, w2, g2, b2 = params
    x = x_nchw.astype(jnp.float32)

    def conv(inp, w):
        return lax.conv_general_dilated(
            inp, w.astype(jnp.float32), (1, 1), "SAME",
            dimension_numbers=("NCHW", "OIHW", "NCHW"))

    def inorm(inp, g, b):
        mu = jnp.mean(inp, axis=(2, 3), keepdims=True)
        var = jnp.mean((inp - mu) ** 2, axis=(2, 3), keepdims=True)
        return ((inp - mu) * lax.rsqrt(var + EPS) * g.reshape(1, -1, 1, 1)
                + b.reshape(1, -1, 1, 1))

    h = jnp.maximum(inorm(conv(x, w1), g1, b1), 0.0)
    h = inorm(conv(h, w2), g2, b2)
    return x + h


if __name__ == "__main__":
    N, C, H, W = 2, 4, 16, 16          # dim_in == dim_out == 4
    key = jax.random.PRNGKey(0)
    kx, k1, k2, k3, k4, k5, k6 = jax.random.split(key, 7)

    x = jax.random.normal(kx, (N, C, H, W), jnp.float32)

    # PyTorch-layout parameters: conv weights OIHW, affine params (C,).
    w1 = 0.2 * jax.random.normal(k1, (C, C, 3, 3), jnp.float32)
    w2 = 0.2 * jax.random.normal(k2, (C, C, 3, 3), jnp.float32)
    g1 = 1.0 + 0.1 * jax.random.normal(k3, (C,), jnp.float32)
    b1 = 0.1 * jax.random.normal(k4, (C,), jnp.float32)
    g2 = 1.0 + 0.1 * jax.random.normal(k5, (C,), jnp.float32)
    b2 = 0.1 * jax.random.normal(k6, (C,), jnp.float32)
    params = (w1, g1, b1, w2, g2, b2)

    out = jax.block_until_ready(residual_block(x, params))
    ref = jax.block_until_ready(_reference(x, params))

    assert out.shape == (N, C, H, W)
    if not jnp.allclose(out, ref, atol=2e-3, rtol=2e-3):
        raise SystemExit(
            "mismatch vs reference: max abs err = %e"
            % float(jnp.max(jnp.abs(out - ref))))
    print("KERNEL_OK")
</pallas_src>

<mosaic_0001>
module attributes {stable_mosaic.version = 11 : i64} {
  func.func @_resblock_kernel(%arg0: i32, %arg1: memref<2x4x256xf32, #tpu.memory_space<vmem>>, %arg2: memref<4x36xf32, #tpu.memory_space<vmem>>, %arg3: memref<4x1xf32, #tpu.memory_space<vmem>>, %arg4: memref<4x1xf32, #tpu.memory_space<vmem>>, %arg5: memref<4x36xf32, #tpu.memory_space<vmem>>, %arg6: memref<4x1xf32, #tpu.memory_space<vmem>>, %arg7: memref<4x1xf32, #tpu.memory_space<vmem>>, %arg8: memref<2x4x256xf32, #tpu.memory_space<vmem>>) attributes {dimension_semantics = [#tpu.dimension_semantics<arbitrary>], iteration_bounds = array<i64: 1>, scalar_prefetch = 0 : i64, scratch_operands = 0 : i64, tpu.core_type = #tpu.core_type<tc>, window_params = [{pipeline_mode = #tpu.pipeline_mode<synchronous>, transform_indices = @transform_0, window_bounds = array<i64: 2, 4, 256>}, {pipeline_mode = #tpu.pipeline_mode<synchronous>, transform_indices = @transform_1, window_bounds = array<i64: 4, 36>}, {pipeline_mode = #tpu.pipeline_mode<synchronous>, transform_indices = @transform_2, window_bounds = array<i64: 4, 1>}, {pipeline_mode = #tpu.pipeline_mode<synchronous>, transform_indices = @transform_3, window_bounds = array<i64: 4, 1>}, {pipeline_mode = #tpu.pipeline_mode<synchronous>, transform_indices = @transform_4, window_bounds = array<i64: 4, 36>}, {pipeline_mode = #tpu.pipeline_mode<synchronous>, transform_indices = @transform_5, window_bounds = array<i64: 4, 1>}, {pipeline_mode = #tpu.pipeline_mode<synchronous>, transform_indices = @transform_6, window_bounds = array<i64: 4, 1>}, {pipeline_mode = #tpu.pipeline_mode<synchronous>, transform_indices = @transform_7, window_bounds = array<i64: 2, 4, 256>}]} {
    %0 = tpu.iota {dimensions = array<i32: 1>} : vector<1x256xi32>
    %c16_i32 = arith.constant 16 : i32
    %c0_i32 = arith.constant 0 : i32
    %1 = arith.cmpi eq, %c16_i32, %c0_i32 : i32
    %c1_i32 = arith.constant 1 : i32
    %2 = arith.select %1, %c1_i32, %c16_i32 : i32
    %3 = vector.broadcast %2 : i32 to vector<1x256xi32>
    %4 = arith.remsi %0, %3 : vector<1x256xi32>
    %c0_i32_0 = arith.constant 0 : i32
    %5 = vector.broadcast %c0_i32_0 : i32 to vector<1x256xi32>
    %6 = arith.cmpi ne, %4, %5 : vector<1x256xi32>
    %c0_i32_1 = arith.constant 0 : i32
    %7 = vector.broadcast %c0_i32_1 : i32 to vector<1x256xi32>
    %8 = arith.cmpi slt, %4, %7 : vector<1x256xi32>
    %c0_i32_2 = arith.constant 0 : i32
    %9 = arith.cmpi slt, %2, %c0_i32_2 : i32
    %10 = vector.broadcast %9 : i1 to vector<1x256xi1>
    %11 = vector.broadcast %10 : vector<1x256xi1> to vector<1x256xi1>
    %12 = arith.xori %8, %11 : vector<1x256xi1>
    %13 = arith.andi %12, %6 : vector<1x256xi1>
    %14 = vector.broadcast %2 : i32 to vector<1x256xi32>
    %15 = arith.addi %4, %14 : vector<1x256xi32>
    %16 = arith.select %13, %15, %4 : vector<1x256xi1>, vector<1x256xi32>
    %c0_i32_3 = arith.constant 0 : i32
    %17 = vector.broadcast %c0_i32_3 : i32 to vector<1x256xi32>
    %18 = arith.cmpi ne, %16, %17 : vector<1x256xi32>
    %19 = arith.extui %18 : vector<1x256xi1> to vector<1x256xi32>
    %20 = arith.sitofp %19 : vector<1x256xi32> to vector<1x256xf32>
    %c15_i32 = arith.constant 15 : i32
    %21 = vector.broadcast %c15_i32 : i32 to vector<1x256xi32>
    %22 = arith.cmpi ne, %16, %21 : vector<1x256xi32>
    %23 = arith.extui %22 : vector<1x256xi1> to vector<1x256xi32>
    %24 = arith.sitofp %23 : vector<1x256xi32> to vector<1x256xf32>
    %c16_i32_4 = arith.constant 16 : i32
    %25 = vector.broadcast %c16_i32_4 : i32 to vector<1x256xi32>
    %26 = arith.cmpi sge, %0, %25 : vector<1x256xi32>
    %27 = arith.extui %26 : vector<1x256xi1> to vector<1x256xi32>
    %28 = arith.sitofp %27 : vector<1x256xi32> to vector<1x256xf32>
    %c240_i32 = arith.constant 240 : i32
    %29 = vector.broadcast %c240_i32 : i32 to vector<1x256xi32>
    %30 = arith.cmpi slt, %0, %29 : vector<1x256xi32>
    %31 = arith.extui %30 : vector<1x256xi1> to vector<1x256xi32>
    %32 = arith.sitofp %31 : vector<1x256xi32> to vector<1x256xf32>
    %c0 = arith.constant 0 : index
    %c0_5 = arith.constant 0 : index
    %33 = vector.load %arg2[%c0, %c0_5] : memref<4x36xf32, #tpu.memory_space<vmem>>, vector<4x36xf32>
    %c0_6 = arith.constant 0 : index
    %c0_7 = arith.constant 0 : index
    %34 = vector.load %arg5[%c0_6, %c0_7] : memref<4x36xf32, #tpu.memory_space<vmem>>, vector<4x36xf32>
    %c0_8 = arith.constant 0 : index
    %c0_9 = arith.constant 0 : index
    %35 = vector.load %arg3[%c0_8, %c0_9] : memref<4x1xf32, #tpu.memory_space<vmem>>, vector<4x1xf32>
    %c0_10 = arith.constant 0 : index
    %c0_11 = arith.constant 0 : index
    %36 = vector.load %arg4[%c0_10, %c0_11] : memref<4x1xf32, #tpu.memory_space<vmem>>, vector<4x1xf32>
    %c0_12 = arith.constant 0 : index
    %c0_13 = arith.constant 0 : index
    %37 = vector.load %arg6[%c0_12, %c0_13] : memref<4x1xf32, #tpu.memory_space<vmem>>, vector<4x1xf32>
    %c0_14 = arith.constant 0 : index
    %c0_15 = arith.constant 0 : index
    %38 = vector.load %arg7[%c0_14, %c0_15] : memref<4x1xf32, #tpu.memory_space<vmem>>, vector<4x1xf32>
    %c0_16 = arith.constant 0 : index
    %c0_17 = arith.constant 0 : index
    %c0_18 = arith.constant 0 : index
    %39 = vector.load %arg1[%c0_16, %c0_17, %c0_18] : memref<2x4x256xf32, #tpu.memory_space<vmem>>, vector<1x4x256xf32>
    %40 = vector.shape_cast %39 : vector<1x4x256xf32> to vector<4x256xf32>
    %c17_i32 = arith.constant 17 : i32
    %41 = tpu.dynamic_rotate %40 by %c17_i32 dim 1 : vector<4x256xf32>, i32 -> vector<4x256xf32>
    %42 = vector.broadcast %28 : vector<1x256xf32> to vector<4x256xf32>
    %43 = arith.mulf %41, %42 : vector<4x256xf32>
    %44 = vector.broadcast %20 : vector<1x256xf32> to vector<4x256xf32>
    %45 = arith.mulf %43, %44 : vector<4x256xf32>
    %c16_i32_19 = arith.constant 16 : i32
    %46 = tpu.dynamic_rotate %40 by %c16_i32_19 dim 1 : vector<4x256xf32>, i32 -> vector<4x256xf32>
    %47 = vector.broadcast %28 : vector<1x256xf32> to vector<4x256xf32>
    %48 = arith.mulf %46, %47 : vector<4x256xf32>
    %c15_i32_20 = arith.constant 15 : i32
    %49 = tpu.dynamic_rotate %40 by %c15_i32_20 dim 1 : vector<4x256xf32>, i32 -> vector<4x256xf32>
    %50 = vector.broadcast %28 : vector<1x256xf32> to vector<4x256xf32>
    %51 = arith.mulf %49, %50 : vector<4x256xf32>
    %52 = vector.broadcast %24 : vector<1x256xf32> to vector<4x256xf32>
    %53 = arith.mulf %51, %52 : vector<4x256xf32>
    %c1_i32_21 = arith.constant 1 : i32
    %54 = tpu.dynamic_rotate %40 by %c1_i32_21 dim 1 : vector<4x256xf32>, i32 -> vector<4x256xf32>
    %55 = vector.broadcast %20 : vector<1x256xf32> to vector<4x256xf32>
    %56 = arith.mulf %54, %55 : vector<4x256xf32>
    %c255_i32 = arith.constant 255 : i32
    %57 = tpu.dynamic_rotate %40 by %c255_i32 dim 1 : vector<4x256xf32>, i32 -> vector<4x256xf32>
    %58 = vector.broadcast %24 : vector<1x256xf32> to vector<4x256xf32>
    %59 = arith.mulf %57, %58 : vector<4x256xf32>
    %c241_i32 = arith.constant 241 : i32
    %60 = tpu.dynamic_rotate %40 by %c241_i32 dim 1 : vector<4x256xf32>, i32 -> vector<4x256xf32>
    %61 = vector.broadcast %32 : vector<1x256xf32> to vector<4x256xf32>
    %62 = arith.mulf %60, %61 : vector<4x256xf32>
    %63 = vector.broadcast %20 : vector<1x256xf32> to vector<4x256xf32>
    %64 = arith.mulf %62, %63 : vector<4x256xf32>
    %c240_i32_22 = arith.constant 240 : i32
    %65 = tpu.dynamic_rotate %40 by %c240_i32_22 dim 1 : vector<4x256xf32>, i32 -> vector<4x256xf32>
    %66 = vector.broadcast %32 : vector<1x256xf32> to vector<4x256xf32>
    %67 = arith.mulf %65, %66 : vector<4x256xf32>
    %c239_i32 = arith.constant 239 : i32
    %68 = tpu.dynamic_rotate %40 by %c239_i32 dim 1 : vector<4x256xf32>, i32 -> vector<4x256xf32>
    %69 = vector.broadcast %32 : vector<1x256xf32> to vector<4x256xf32>
    %70 = arith.mulf %68, %69 : vector<4x256xf32>
    %71 = vector.broadcast %24 : vector<1x256xf32> to vector<4x256xf32>
    %72 = arith.mulf %70, %71 : vector<4x256xf32>
    %73 = tpu.concatenate %45, %48, %53, %56, %40, %59, %64, %67, %72 in 0 : vector<4x256xf32>, vector<4x256xf32>, vector<4x256xf32>, vector<4x256xf32>, vector<4x256xf32>, vector<4x256xf32>, vector<4x256xf32>, vector<4x256xf32>, vector<4x256xf32> -> vector<36x256xf32>
    %cst = arith.constant dense<0.000000e+00> : vector<4x256xf32>
    %74 = tpu.matmul %33, %73, %cst {dimension_numbers = #tpu.dot_dimension_numbers<[1], [0], [0], [1], [0, 0, 1, 1], [], []>} : vector<4x36xf32>, vector<36x256xf32>, vector<4x256xf32> -> vector<4x256xf32>
    %cst_23 = arith.constant dense<0.000000e+00> : vector<4xf32>
    %75 = vector.multi_reduction <add>, %74, %cst_23 [1] : vector<4x256xf32> to vector<4xf32>
    %76 = vector.shape_cast %75 : vector<4xf32> to vector<4x1xf32>
    %cst_24 = arith.constant 3.906250e-03 : f32
    %77 = vector.broadcast %cst_24 : f32 to vector<4x1xf32>
    %78 = arith.mulf %76, %77 : vector<4x1xf32>
    %79 = vector.broadcast %78 : vector<4x1xf32> to vector<4x256xf32>
    %80 = arith.subf %74, %79 : vector<4x256xf32>
    %81 = arith.mulf %80, %80 : vector<4x256xf32>
    %cst_25 = arith.constant dense<0.000000e+00> : vector<4xf32>
    %82 = vector.multi_reduction <add>, %81, %cst_25 [1] : vector<4x256xf32> to vector<4xf32>
    %83 = vector.shape_cast %82 : vector<4xf32> to vector<4x1xf32>
    %cst_26 = arith.constant 3.906250e-03 : f32
    %84 = vector.broadcast %cst_26 : f32 to vector<4x1xf32>
    %85 = arith.mulf %83, %84 : vector<4x1xf32>
    %cst_27 = arith.constant 9.99999974E-6 : f32
    %86 = vector.broadcast %cst_27 : f32 to vector<4x1xf32>
    %87 = arith.addf %85, %86 : vector<4x1xf32>
    %88 = math.rsqrt %87 : vector<4x1xf32>
    %89 = vector.broadcast %88 : vector<4x1xf32> to vector<4x256xf32>
    %90 = arith.mulf %80, %89 : vector<4x256xf32>
    %91 = vector.broadcast %35 : vector<4x1xf32> to vector<4x256xf32>
    %92 = arith.mulf %90, %91 : vector<4x256xf32>
    %93 = vector.broadcast %36 : vector<4x1xf32> to vector<4x256xf32>
    %94 = arith.addf %92, %93 : vector<4x256xf32>
    %cst_28 = arith.constant 0.000000e+00 : f32
    %95 = vector.broadcast %cst_28 : f32 to vector<4x256xf32>
    %96 = arith.maximumf %94, %95 : vector<4x256xf32>
    %c17_i32_29 = arith.constant 17 : i32
    %97 = tpu.dynamic_rotate %96 by %c17_i32_29 dim 1 : vector<4x256xf32>, i32 -> vector<4x256xf32>
    %98 = vector.broadcast %28 : vector<1x256xf32> to vector<4x256xf32>
    %99 = arith.mulf %97, %98 : vector<4x256xf32>
    %100 = vector.broadcast %20 : vector<1x256xf32> to vector<4x256xf32>
    %101 = arith.mulf %99, %100 : vector<4x256xf32>
    %c16_i32_30 = arith.constant 16 : i32
    %102 = tpu.dynamic_rotate %96 by %c16_i32_30 dim 1 : vector<4x256xf32>, i32 -> vector<4x256xf32>
    %103 = vector.broadcast %28 : vector<1x256xf32> to vector<4x256xf32>
    %104 = arith.mulf %102, %103 : vector<4x256xf32>
    %c15_i32_31 = arith.constant 15 : i32
    %105 = tpu.dynamic_rotate %96 by %c15_i32_31 dim 1 : vector<4x256xf32>, i32 -> vector<4x256xf32>
    %106 = vector.broadcast %28 : vector<1x256xf32> to vector<4x256xf32>
    %107 = arith.mulf %105, %106 : vector<4x256xf32>
    %108 = vector.broadcast %24 : vector<1x256xf32> to vector<4x256xf32>
    %109 = arith.mulf %107, %108 : vector<4x256xf32>
    %c1_i32_32 = arith.constant 1 : i32
    %110 = tpu.dynamic_rotate %96 by %c1_i32_32 dim 1 : vector<4x256xf32>, i32 -> vector<4x256xf32>
    %111 = vector.broadcast %20 : vector<1x256xf32> to vector<4x256xf32>
    %112 = arith.mulf %110, %111 : vector<4x256xf32>
    %c255_i32_33 = arith.constant 255 : i32
    %113 = tpu.dynamic_rotate %96 by %c255_i32_33 dim 1 : vector<4x256xf32>, i32 -> vector<4x256xf32>
    %114 = vector.broadcast %24 : vector<1x256xf32> to vector<4x256xf32>
    %115 = arith.mulf %113, %114 : vector<4x256xf32>
    %c241_i32_34 = arith.constant 241 : i32
    %116 = tpu.dynamic_rotate %96 by %c241_i32_34 dim 1 : vector<4x256xf32>, i32 -> vector<4x256xf32>
    %117 = vector.broadcast %32 : vector<1x256xf32> to vector<4x256xf32>
    %118 = arith.mulf %116, %117 : vector<4x256xf32>
    %119 = vector.broadcast %20 : vector<1x256xf32> to vector<4x256xf32>
    %120 = arith.mulf %118, %119 : vector<4x256xf32>
    %c240_i32_35 = arith.constant 240 : i32
    %121 = tpu.dynamic_rotate %96 by %c240_i32_35 dim 1 : vector<4x256xf32>, i32 -> vector<4x256xf32>
    %122 = vector.broadcast %32 : vector<1x256xf32> to vector<4x256xf32>
    %123 = arith.mulf %121, %122 : vector<4x256xf32>
    %c239_i32_36 = arith.constant 239 : i32
    %124 = tpu.dynamic_rotate %96 by %c239_i32_36 dim 1 : vector<4x256xf32>, i32 -> vector<4x256xf32>
    %125 = vector.broadcast %32 : vector<1x256xf32> to vector<4x256xf32>
    %126 = arith.mulf %124, %125 : vector<4x256xf32>
    %127 = vector.broadcast %24 : vector<1x256xf32> to vector<4x256xf32>
    %128 = arith.mulf %126, %127 : vector<4x256xf32>
    %129 = tpu.concatenate %101, %104, %109, %112, %96, %115, %120, %123, %128 in 0 : vector<4x256xf32>, vector<4x256xf32>, vector<4x256xf32>, vector<4x256xf32>, vector<4x256xf32>, vector<4x256xf32>, vector<4x256xf32>, vector<4x256xf32>, vector<4x256xf32> -> vector<36x256xf32>
    %cst_37 = arith.constant dense<0.000000e+00> : vector<4x256xf32>
    %130 = tpu.matmul %34, %129, %cst_37 {dimension_numbers = #tpu.dot_dimension_numbers<[1], [0], [0], [1], [0, 0, 1, 1], [], []>} : vector<4x36xf32>, vector<36x256xf32>, vector<4x256xf32> -> vector<4x256xf32>
    %cst_38 = arith.constant dense<0.000000e+00> : vector<4xf32>
    %131 = vector.multi_reduction <add>, %130, %cst_38 [1] : vector<4x256xf32> to vector<4xf32>
    %132 = vector.shape_cast %131 : vector<4xf32> to vector<4x1xf32>
    %cst_39 = arith.constant 3.906250e-03 : f32
    %133 = vector.broadcast %cst_39 : f32 to vector<4x1xf32>
    %134 = arith.mulf %132, %133 : vector<4x1xf32>
    %135 = vector.broadcast %134 : vector<4x1xf32> to vector<4x256xf32>
    %136 = arith.subf %130, %135 : vector<4x256xf32>
    %137 = arith.mulf %136, %136 : vector<4x256xf32>
    %cst_40 = arith.constant dense<0.000000e+00> : vector<4xf32>
    %138 = vector.multi_reduction <add>, %137, %cst_40 [1] : vector<4x256xf32> to vector<4xf32>
    %139 = vector.shape_cast %138 : vector<4xf32> to vector<4x1xf32>
    %cst_41 = arith.constant 3.906250e-03 : f32
    %140 = vector.broadcast %cst_41 : f32 to vector<4x1xf32>
    %141 = arith.mulf %139, %140 : vector<4x1xf32>
    %cst_42 = arith.constant 9.99999974E-6 : f32
    %142 = vector.broadcast %cst_42 : f32 to vector<4x1xf32>
    %143 = arith.addf %141, %142 : vector<4x1xf32>
    %144 = math.rsqrt %143 : vector<4x1xf32>
    %145 = vector.broadcast %144 : vector<4x1xf32> to vector<4x256xf32>
    %146 = arith.mulf %136, %145 : vector<4x256xf32>
    %147 = vector.broadcast %37 : vector<4x1xf32> to vector<4x256xf32>
    %148 = arith.mulf %146, %147 : vector<4x256xf32>
    %149 = vector.broadcast %38 : vector<4x1xf32> to vector<4x256xf32>
    %150 = arith.addf %148, %149 : vector<4x256xf32>
    %151 = arith.addf %40, %150 : vector<4x256xf32>
    %c0_43 = arith.constant 0 : index
    %c0_44 = arith.constant 0 : index
    %c0_45 = arith.constant 0 : index
    %152 = vector.load %arg8[%c0_43, %c0_44, %c0_45] : memref<2x4x256xf32, #tpu.memory_space<vmem>>, vector<1x4x256xf32>
    %153 = vector.shape_cast %152 : vector<1x4x256xf32> to vector<4x256xf32>
    %154 = vector.shape_cast %151 : vector<4x256xf32> to vector<1x4x256xf32>
    tpu.vector_store %arg8[%c0_43, %c0_44, %c0_45], %154 {strides = array<i32>} : memref<2x4x256xf32, #tpu.memory_space<vmem>>, vector<1x4x256xf32>,
    %c1 = arith.constant 1 : index
    %c0_46 = arith.constant 0 : index
    %c0_47 = arith.constant 0 : index
    %155 = vector.load %arg1[%c1, %c0_46, %c0_47] : memref<2x4x256xf32, #tpu.memory_space<vmem>>, vector<1x4x256xf32>
    %156 = vector.shape_cast %155 : vector<1x4x256xf32> to vector<4x256xf32>
    %c17_i32_48 = arith.constant 17 : i32
    %157 = tpu.dynamic_rotate %156 by %c17_i32_48 dim 1 : vector<4x256xf32>, i32 -> vector<4x256xf32>
    %158 = vector.broadcast %28 : vector<1x256xf32> to vector<4x256xf32>
    %159 = arith.mulf %157, %158 : vector<4x256xf32>
    %160 = vector.broadcast %20 : vector<1x256xf32> to vector<4x256xf32>
    %161 = arith.mulf %159, %160 : vector<4x256xf32>
    %c16_i32_49 = arith.constant 16 : i32
    %162 = tpu.dynamic_rotate %156 by %c16_i32_49 dim 1 : vector<4x256xf32>, i32 -> vector<4x256xf32>
    %163 = vector.broadcast %28 : vector<1x256xf32> to vector<4x256xf32>
    %164 = arith.mulf %162, %163 : vector<4x256xf32>
    %c15_i32_50 = arith.constant 15 : i32
    %165 = tpu.dynamic_rotate %156 by %c15_i32_50 dim 1 : vector<4x256xf32>, i32 -> vector<4x256xf32>
    %166 = vector.broadcast %28 : vector<1x256xf32> to vector<4x256xf32>
    %167 = arith.mulf %165, %166 : vector<4x256xf32>
    %168 = vector.broadcast %24 : vector<1x256xf32> to vector<4x256xf32>
    %169 = arith.mulf %167, %168 : vector<4x256xf32>
    %c1_i32_51 = arith.constant 1 : i32
    %170 = tpu.dynamic_rotate %156 by %c1_i32_51 dim 1 : vector<4x256xf32>, i32 -> vector<4x256xf32>
    %171 = vector.broadcast %20 : vector<1x256xf32> to vector<4x256xf32>
    %172 = arith.mulf %170, %171 : vector<4x256xf32>
    %c255_i32_52 = arith.constant 255 : i32
    %173 = tpu.dynamic_rotate %156 by %c255_i32_52 dim 1 : vector<4x256xf32>, i32 -> vector<4x256xf32>
    %174 = vector.broadcast %24 : vector<1x256xf32> to vector<4x256xf32>
    %175 = arith.mulf %173, %174 : vector<4x256xf32>
    %c241_i32_53 = arith.constant 241 : i32
    %176 = tpu.dynamic_rotate %156 by %c241_i32_53 dim 1 : vector<4x256xf32>, i32 -> vector<4x256xf32>
    %177 = vector.broadcast %32 : vector<1x256xf32> to vector<4x256xf32>
    %178 = arith.mulf %176, %177 : vector<4x256xf32>
    %179 = vector.broadcast %20 : vector<1x256xf32> to vector<4x256xf32>
    %180 = arith.mulf %178, %179 : vector<4x256xf32>
    %c240_i32_54 = arith.constant 240 : i32
    %181 = tpu.dynamic_rotate %156 by %c240_i32_54 dim 1 : vector<4x256xf32>, i32 -> vector<4x256xf32>
    %182 = vector.broadcast %32 : vector<1x256xf32> to vector<4x256xf32>
    %183 = arith.mulf %181, %182 : vector<4x256xf32>
    %c239_i32_55 = arith.constant 239 : i32
    %184 = tpu.dynamic_rotate %156 by %c239_i32_55 dim 1 : vector<4x256xf32>, i32 -> vector<4x256xf32>
    %185 = vector.broadcast %32 : vector<1x256xf32> to vector<4x256xf32>
    %186 = arith.mulf %184, %185 : vector<4x256xf32>
    %187 = vector.broadcast %24 : vector<1x256xf32> to vector<4x256xf32>
    %188 = arith.mulf %186, %187 : vector<4x256xf32>
    %189 = tpu.concatenate %161, %164, %169, %172, %156, %175, %180, %183, %188 in 0 : vector<4x256xf32>, vector<4x256xf32>, vector<4x256xf32>, vector<4x256xf32>, vector<4x256xf32>, vector<4x256xf32>, vector<4x256xf32>, vector<4x256xf32>, vector<4x256xf32> -> vector<36x256xf32>
    %cst_56 = arith.constant dense<0.000000e+00> : vector<4x256xf32>
    %190 = tpu.matmul %33, %189, %cst_56 {dimension_numbers = #tpu.dot_dimension_numbers<[1], [0], [0], [1], [0, 0, 1, 1], [], []>} : vector<4x36xf32>, vector<36x256xf32>, vector<4x256xf32> -> vector<4x256xf32>
    %cst_57 = arith.constant dense<0.000000e+00> : vector<4xf32>
    %191 = vector.multi_reduction <add>, %190, %cst_57 [1] : vector<4x256xf32> to vector<4xf32>
    %192 = vector.shape_cast %191 : vector<4xf32> to vector<4x1xf32>
    %cst_58 = arith.constant 3.906250e-03 : f32
    %193 = vector.broadcast %cst_58 : f32 to vector<4x1xf32>
    %194 = arith.mulf %192, %193 : vector<4x1xf32>
    %195 = vector.broadcast %194 : vector<4x1xf32> to vector<4x256xf32>
    %196 = arith.subf %190, %195 : vector<4x256xf32>
    %197 = arith.mulf %196, %196 : vector<4x256xf32>
    %cst_59 = arith.constant dense<0.000000e+00> : vector<4xf32>
    %198 = vector.multi_reduction <add>, %197, %cst_59 [1] : vector<4x256xf32> to vector<4xf32>
    %199 = vector.shape_cast %198 : vector<4xf32> to vector<4x1xf32>
    %cst_60 = arith.constant 3.906250e-03 : f32
    %200 = vector.broadcast %cst_60 : f32 to vector<4x1xf32>
    %201 = arith.mulf %199, %200 : vector<4x1xf32>
    %cst_61 = arith.constant 9.99999974E-6 : f32
    %202 = vector.broadcast %cst_61 : f32 to vector<4x1xf32>
    %203 = arith.addf %201, %202 : vector<4x1xf32>
    %204 = math.rsqrt %203 : vector<4x1xf32>
    %205 = vector.broadcast %204 : vector<4x1xf32> to vector<4x256xf32>
    %206 = arith.mulf %196, %205 : vector<4x256xf32>
    %207 = vector.broadcast %35 : vector<4x1xf32> to vector<4x256xf32>
    %208 = arith.mulf %206, %207 : vector<4x256xf32>
    %209 = vector.broadcast %36 : vector<4x1xf32> to vector<4x256xf32>
    %210 = arith.addf %208, %209 : vector<4x256xf32>
    %cst_62 = arith.constant 0.000000e+00 : f32
    %211 = vector.broadcast %cst_62 : f32 to vector<4x256xf32>
    %212 = arith.maximumf %210, %211 : vector<4x256xf32>
    %c17_i32_63 = arith.constant 17 : i32
    %213 = tpu.dynamic_rotate %212 by %c17_i32_63 dim 1 : vector<4x256xf32>, i32 -> vector<4x256xf32>
    %214 = vector.broadcast %28 : vector<1x256xf32> to vector<4x256xf32>
    %215 = arith.mulf %213, %214 : vector<4x256xf32>
    %216 = vector.broadcast %20 : vector<1x256xf32> to vector<4x256xf32>
    %217 = arith.mulf %215, %216 : vector<4x256xf32>
    %c16_i32_64 = arith.constant 16 : i32
    %218 = tpu.dynamic_rotate %212 by %c16_i32_64 dim 1 : vector<4x256xf32>, i32 -> vector<4x256xf32>
    %219 = vector.broadcast %28 : vector<1x256xf32> to vector<4x256xf32>
    %220 = arith.mulf %218, %219 : vector<4x256xf32>
    %c15_i32_65 = arith.constant 15 : i32
    %221 = tpu.dynamic_rotate %212 by %c15_i32_65 dim 1 : vector<4x256xf32>, i32 -> vector<4x256xf32>
    %222 = vector.broadcast %28 : vector<1x256xf32> to vector<4x256xf32>
    %223 = arith.mulf %221, %222 : vector<4x256xf32>
    %224 = vector.broadcast %24 : vector<1x256xf32> to vector<4x256xf32>
    %225 = arith.mulf %223, %224 : vector<4x256xf32>
    %c1_i32_66 = arith.constant 1 : i32
    %226 = tpu.dynamic_rotate %212 by %c1_i32_66 dim 1 : vector<4x256xf32>, i32 -> vector<4x256xf32>
    %227 = vector.broadcast %20 : vector<1x256xf32> to vector<4x256xf32>
    %228 = arith.mulf %226, %227 : vector<4x256xf32>
    %c255_i32_67 = arith.constant 255 : i32
    %229 = tpu.dynamic_rotate %212 by %c255_i32_67 dim 1 : vector<4x256xf32>, i32 -> vector<4x256xf32>
    %230 = vector.broadcast %24 : vector<1x256xf32> to vector<4x256xf32>
    %231 = arith.mulf %229, %230 : vector<4x256xf32>
    %c241_i32_68 = arith.constant 241 : i32
    %232 = tpu.dynamic_rotate %212 by %c241_i32_68 dim 1 : vector<4x256xf32>, i32 -> vector<4x256xf32>
    %233 = vector.broadcast %32 : vector<1x256xf32> to vector<4x256xf32>
    %234 = arith.mulf %232, %233 : vector<4x256xf32>
    %235 = vector.broadcast %20 : vector<1x256xf32> to vector<4x256xf32>
    %236 = arith.mulf %234, %235 : vector<4x256xf32>
    %c240_i32_69 = arith.constant 240 : i32
    %237 = tpu.dynamic_rotate %212 by %c240_i32_69 dim 1 : vector<4x256xf32>, i32 -> vector<4x256xf32>
    %238 = vector.broadcast %32 : vector<1x256xf32> to vector<4x256xf32>
    %239 = arith.mulf %237, %238 : vector<4x256xf32>
    %c239_i32_70 = arith.constant 239 : i32
    %240 = tpu.dynamic_rotate %212 by %c239_i32_70 dim 1 : vector<4x256xf32>, i32 -> vector<4x256xf32>
    %241 = vector.broadcast %32 : vector<1x256xf32> to vector<4x256xf32>
    %242 = arith.mulf %240, %241 : vector<4x256xf32>
    %243 = vector.broadcast %24 : vector<1x256xf32> to vector<4x256xf32>
    %244 = arith.mulf %242, %243 : vector<4x256xf32>
    %245 = tpu.concatenate %217, %220, %225, %228, %212, %231, %236, %239, %244 in 0 : vector<4x256xf32>, vector<4x256xf32>, vector<4x256xf32>, vector<4x256xf32>, vector<4x256xf32>, vector<4x256xf32>, vector<4x256xf32>, vector<4x256xf32>, vector<4x256xf32> -> vector<36x256xf32>
    %cst_71 = arith.constant dense<0.000000e+00> : vector<4x256xf32>
    %246 = tpu.matmul %34, %245, %cst_71 {dimension_numbers = #tpu.dot_dimension_numbers<[1], [0], [0], [1], [0, 0, 1, 1], [], []>} : vector<4x36xf32>, vector<36x256xf32>, vector<4x256xf32> -> vector<4x256xf32>
    %cst_72 = arith.constant dense<0.000000e+00> : vector<4xf32>
    %247 = vector.multi_reduction <add>, %246, %cst_72 [1] : vector<4x256xf32> to vector<4xf32>
    %248 = vector.shape_cast %247 : vector<4xf32> to vector<4x1xf32>
    %cst_73 = arith.constant 3.906250e-03 : f32
    %249 = vector.broadcast %cst_73 : f32 to vector<4x1xf32>
    %250 = arith.mulf %248, %249 : vector<4x1xf32>
    %251 = vector.broadcast %250 : vector<4x1xf32> to vector<4x256xf32>
    %252 = arith.subf %246, %251 : vector<4x256xf32>
    %253 = arith.mulf %252, %252 : vector<4x256xf32>
    %cst_74 = arith.constant dense<0.000000e+00> : vector<4xf32>
    %254 = vector.multi_reduction <add>, %253, %cst_74 [1] : vector<4x256xf32> to vector<4xf32>
    %255 = vector.shape_cast %254 : vector<4xf32> to vector<4x1xf32>
    %cst_75 = arith.constant 3.906250e-03 : f32
    %256 = vector.broadcast %cst_75 : f32 to vector<4x1xf32>
    %257 = arith.mulf %255, %256 : vector<4x1xf32>
    %cst_76 = arith.constant 9.99999974E-6 : f32
    %258 = vector.broadcast %cst_76 : f32 to vector<4x1xf32>
    %259 = arith.addf %257, %258 : vector<4x1xf32>
    %260 = math.rsqrt %259 : vector<4x1xf32>
    %261 = vector.broadcast %260 : vector<4x1xf32> to vector<4x256xf32>
    %262 = arith.mulf %252, %261 : vector<4x256xf32>
    %263 = vector.broadcast %37 : vector<4x1xf32> to vector<4x256xf32>
    %264 = arith.mulf %262, %263 : vector<4x256xf32>
    %265 = vector.broadcast %38 : vector<4x1xf32> to vector<4x256xf32>
    %266 = arith.addf %264, %265 : vector<4x256xf32>
    %267 = arith.addf %156, %266 : vector<4x256xf32>
    %c1_77 = arith.constant 1 : index
    %c0_78 = arith.constant 0 : index
    %c0_79 = arith.constant 0 : index
    %268 = vector.load %arg8[%c1_77, %c0_78, %c0_79] : memref<2x4x256xf32, #tpu.memory_space<vmem>>, vector<1x4x256xf32>
    %269 = vector.shape_cast %268 : vector<1x4x256xf32> to vector<4x256xf32>
    %270 = vector.shape_cast %267 : vector<4x256xf32> to vector<1x4x256xf32>
    tpu.vector_store %arg8[%c1_77, %c0_78, %c0_79], %270 {strides = array<i32>} : memref<2x4x256xf32, #tpu.memory_space<vmem>>, vector<1x4x256xf32>,
    return
  }
  func.func @transform_0(%arg0: i32) -> (i32, i32, i32) {
    %c0_i32 = arith.constant 0 : i32
    %c0_i32_0 = arith.constant 0 : i32
    %c0_i32_1 = arith.constant 0 : i32
    %c0_i32_2 = arith.constant 0 : i32
    return %c0_i32, %c0_i32_0, %c0_i32_1 : i32, i32, i32
  }
  func.func @transform_1(%arg0: i32) -> (i32, i32) {
    %c0_i32 = arith.constant 0 : i32
    %c0_i32_0 = arith.constant 0 : i32
    %c0_i32_1 = arith.constant 0 : i32
    return %c0_i32, %c0_i32_0 : i32, i32
  }
  func.func @transform_2(%arg0: i32) -> (i32, i32) {
    %c0_i32 = arith.constant 0 : i32
    %c0_i32_0 = arith.constant 0 : i32
    %c0_i32_1 = arith.constant 0 : i32
    return %c0_i32, %c0_i32_0 : i32, i32
  }
  func.func @transform_3(%arg0: i32) -> (i32, i32) {
    %c0_i32 = arith.constant 0 : i32
    %c0_i32_0 = arith.constant 0 : i32
    %c0_i32_1 = arith.constant 0 : i32
    return %c0_i32, %c0_i32_0 : i32, i32
  }
  func.func @transform_4(%arg0: i32) -> (i32, i32) {
    %c0_i32 = arith.constant 0 : i32
    %c0_i32_0 = arith.constant 0 : i32
    %c0_i32_1 = arith.constant 0 : i32
    return %c0_i32, %c0_i32_0 : i32, i32
  }
  func.func @transform_5(%arg0: i32) -> (i32, i32) {
    %c0_i32 = arith.constant 0 : i32
    %c0_i32_0 = arith.constant 0 : i32
    %c0_i32_1 = arith.constant 0 : i32
    return %c0_i32, %c0_i32_0 : i32, i32
  }
  func.func @transform_6(%arg0: i32) -> (i32, i32) {
    %c0_i32 = arith.constant 0 : i32
    %c0_i32_0 = arith.constant 0 : i32
    %c0_i32_1 = arith.constant 0 : i32
    return %c0_i32, %c0_i32_0 : i32, i32
  }
  func.func @transform_7(%arg0: i32) -> (i32, i32, i32) {
    %c0_i32 = arith.constant 0 : i32
    %c0_i32_0 = arith.constant 0 : i32
    %c0_i32_1 = arith.constant 0 : i32
    %c0_i32_2 = arith.constant 0 : i32
    return %c0_i32, %c0_i32_0, %c0_i32_1 : i32, i32, i32
  }
}

</mosaic_0001>

<bundles_post_ra>
// kernel: tpu_custom_call.1
= control target key start
LH: loop header
LB: loop body
LE: loop exit
PB: predicated region body
PF: predicated region fallthrough
CT: control target
= control target key end

     0   :  { %s1084_s26 = smov 17   ;;  %s1085_s27 = smov 1   ;;  %s1642_s0 = inlined_call_operand.vmem [shape: f32[2,4,256], index: 0, kind: input, shape index: {}]   ;;  %s1643_s1 = inlined_call_operand.vmem [shape: f32[4,36], index: 1, kind: input, shape index: {}]   ;;  %s1644_s2 = inlined_call_operand.vmem [shape: f32[4,1], index: 2, kind: input, shape index: {}]   ;;  %s1645_s3 = inlined_call_operand.vmem [shape: f32[4,1], index: 3, kind: input, shape index: {}]   ;;  %s1646_s4 = inlined_call_operand.vmem [shape: f32[4,36], index: 4, kind: input, shape index: {}]   ;;  %s1647_s5 = inlined_call_operand.vmem [shape: f32[4,1], index: 5, kind: input, shape index: {}]   ;;  %s1648_s6 = inlined_call_operand.vmem [shape: f32[4,1], index: 6, kind: input, shape index: {}]   ;;  %s1649_s7 = inlined_call_operand.hbm [shape: f32[2,4,256], index: 7, kind: output, shape index: {}]  }
   0x1   :  { %v1140_v0 = vld [vmem:[%s1642_s0] sm:$0xff] }
   0x2   :  { %88 = vrot.lane.b32.xlu1 %v1140_v0, %s1084_s26  ;;  %119 = vrot.lane.b32.xlu0 %v1140_v0, %s1085_s27  ;;  %v1148_v1 = vcombine.high %v1140_v0, %v1140_v0 }
   0x3   :  { %12 = vsyncpa [#allocation3], 0  ;;  %v1086_v2 = vmov 0.0   ;;  %s1087_s28 = smov 16   ;;  %s1088_s29 = smov 15   ;;  %v1175_v3 = vld [vmem:[%s1642_s0 + $0x8] sm:$0xff]  ;;  %v27_v5 = vlaneseq }
   0x4   :  { %275 = vmatprep.mubr.f32.mxu0 %v1086_v2  ;;  %495 = vmatprep.mubr.f32.mxu1 %v1086_v2  ;;  %s1089_s30 = smov 127   ;;  %s1090_s8 = smov 113   ;;  %v1183_v4 = vcombine.high %v1175_v3, %v1175_v3  ;;  %vm192_vm9 = vcmask 1043456   ;;  %vm201_vm15 = vcmask 293888  }
   0x5   :  { %s1091_s11 = smov 112   ;;  %s1092_s12 = smov 111   ;;  %v1221_v6 = vand.u32 127, %v27_v5 }
   0x6   :  { %90 = vrot.lane.b32.xlu1 %v1148_v1, %s1084_s26  ;;  %121 = vrot.lane.b32.xlu0 %v1148_v1, %s1085_s27  ;;  %s1094_s21 = smov [#allocation2]  }
   0x7   :  { %v1224_v7 = vadd.s32 128, %v1221_v6  ;;  %v34_v11 = vand.u32 15, %v1221_v6  ;;  %vm123_vm1 = vcmp.lt.s32.totalorder %v1221_v6, 1  ;;  %vm66_vm2 = vcmp.ge.s32.totalorder %v1221_v6, 16  ;;  %s971_s22 = sshll.u32 %s1094_s21, 4  ;;  %s972_s22 = int_to_ptr.vmem [resolvable:$true] %s971_s22 }
   0x8   :  { %vm92_vm3 = vcmp.lt.s32.totalorder %v1221_v6, 17  ;;  %vm103_vm5 = vcmp.lt.s32.totalorder %v1221_v6, 16  ;;  %v1238_v16 = vsel %vm66_vm2, 1.0, %v1086_v2  ;;  %vm112_vm7 = vcmp.lt.s32.totalorder %v1221_v6, 15  ;;  %s1060_s25 = scalar_lea.vmem %s972_s22, 256  ;;  %p1065_p1 = scmp.lt.s32.totalorder %s972_s22, %s972_s22 }
   0x9   :  { %v41_v10 = vand.u32 15, %v1224_v7  ;;  %vm54_vm4 = vcmp.ne.s32.totalorder %v34_v11, 0  ;;  %vm60_vm8 = vcmp.ne.s32.totalorder %v34_v11, 15  ;;  %vm132_vm10 = vcmp.lt.s32.totalorder %v1221_v6, 127  ;;  %p1061_p0 = scmp.ne.s32.totalorder %s972_s22, %s1060_s25  ;;  %p1066_p2 = scmp.lt.s32.totalorder %s1060_s25, %s1060_s25 }
   0xa   :  { %101 = vrot.lane.b32.xlu1 %v1148_v1, %s1087_s28  ;;  %99 = vrot.lane.b32.xlu0 %v1140_v0, %s1087_s28  ;;  %v1244_v20 = vsel %vm54_vm4, 1.0, %v1086_v2  ;;  %v1263_v34 = vsel %vm60_vm8, 1.0, %v1086_v2  ;;  %vm73_vm11 = vcmp.lt.s32.totalorder %v1224_v7, 240  ;;  %vm141_vm12 = vcmp.lt.s32.totalorder %v1221_v6, 113 }
   0xb   :  { %vm55_vm0 = vcmp.ne.s32.totalorder %v41_v10, 0  ;;  %vm61_vm6 = vcmp.ne.s32.totalorder %v41_v10, 15  ;;  %v1285_v56 = vsel %vm73_vm11, 1.0, %v1086_v2  ;;  %vm152_vm13 = vcmp.lt.s32.totalorder %v1221_v6, 112  ;;  %p1067_p3 = por %p1066_p2, %p1065_p1 }
   0xc   :  { %v1233_v14 = vsel %vm55_vm0, 1.0, %v1086_v2  ;;  %v1258_v28 = vsel %vm61_vm6, 1.0, %v1086_v2  ;;  %vm161_vm14 = vcmp.lt.s32.totalorder %v1221_v6, 111 }
   0xd   :  { %p1068_p4 = pnand %p1067_p3, %p1061_p0 }
   0xe   :  { %110 = vrot.lane.b32.xlu1 %v1148_v1, %s1088_s29  ;;  %108 = vrot.lane.b32.xlu0 %v1140_v0, %s1088_s29 }
  0x12   :  { %130 = vrot.lane.b32.xlu1 %v1148_v1, %s1089_s30  ;;  %128 = vrot.lane.b32.xlu0 %v1140_v0, %s1089_s30 }
  0x16   :  { %139 = vrot.lane.b32.xlu1 %v1148_v1, %s1090_s8  ;;  %137 = vrot.lane.b32.xlu0 %v1140_v0, %s1090_s8 }
  0x1a   :  { %150 = vrot.lane.b32.xlu1 %v1148_v1, %s1091_s11  ;;  %148 = vrot.lane.b32.xlu0 %v1140_v0, %s1091_s11 }
  0x1e   :  { %577 = vrot.lane.b32.xlu1 %v1183_v4, %s1085_s27  ;;  %575 = vrot.lane.b32.xlu0 %v1175_v3, %s1085_s27 }
  0x22   :  { %159 = vrot.lane.b32.xlu1 %v1148_v1, %s1092_s12  ;;  %157 = vrot.lane.b32.xlu0 %v1140_v0, %s1092_s12 }
  0x26   :  { %549 = vrot.lane.b32.xlu1 %v1183_v4, %s1084_s26  ;;  %547 = vrot.lane.b32.xlu0 %v1175_v3, %s1084_s26 }
  0x2a   :  { %559 = vrot.lane.b32.xlu1 %v1183_v4, %s1087_s28  ;;  %557 = vrot.lane.b32.xlu0 %v1175_v3, %s1087_s28 }
  0x2e   :  { %567 = vrot.lane.b32.xlu1 %v1183_v4, %s1088_s29  ;;  %565 = vrot.lane.b32.xlu0 %v1175_v3, %s1088_s29 }
  0x32   :  { %585 = vrot.lane.b32.xlu1 %v1183_v4, %s1089_s30  ;;  %583 = vrot.lane.b32.xlu0 %v1175_v3, %s1089_s30 }
  0x36   :  { %593 = vrot.lane.b32.xlu1 %v1183_v4, %s1090_s8  ;;  %591 = vrot.lane.b32.xlu0 %v1175_v3, %s1090_s8 }
  0x3a   :  { %603 = vrot.lane.b32.xlu1 %v1183_v4, %s1091_s11  ;;  %601 = vrot.lane.b32.xlu0 %v1175_v3, %s1091_s11 }
  0x3e   :  { %611 = vrot.lane.b32.xlu1 %v1183_v4, %s1092_s12  ;;  %609 = vrot.lane.b32.xlu0 %v1175_v3, %s1092_s12 }
  0x74   :  { %v89_v8 = vpop.permute.xlu1 %88  ;;  %v120_v9 = vpop.permute.xlu0 %119 }
  0x78   :  { %v91_v12 = vpop.permute.xlu1 %90  ;;  %v122_v13 = vpop.permute.xlu0 %121 }
  0x79   :  { %v124_v15 = vsel %vm123_vm1, %v120_v9, %v122_v13  ;;  %v94_v17 = vsel %vm92_vm3, %v91_v12, %v89_v8  ;;  %v125_v21 = vsel %vm123_vm1, %v122_v13, %v120_v9  ;;  %v93_v24 = vsel %vm92_vm3, %v89_v8, %v91_v12 }
  0x7a   :  { %v127_v25 = vmul.f32 %v1233_v14, %v124_v15  ;;  %v95_v27 = vmul.f32 %v1238_v16, %v94_v17  ;;  %v126_v29 = vmul.f32 %v1244_v20, %v125_v21  ;;  %v98_v33 = vmul.f32 %v1233_v14, %v93_v24 }
  0x7c   :  { %v102_v18 = vpop.permute.xlu1 %101  ;;  %v100_v19 = vpop.permute.xlu0 %99  ;;  %v177_v37 = vrot.slane %v127_v25, 4  ;;  %v97_v41 = vmul.f32 %v1244_v20, %v95_v27  ;;  %v176_v42 = vrot.slane %v126_v29, 4 }
  0x7d   :  { %v104_v22 = vsel %vm103_vm5, %v100_v19, %v102_v18  ;;  %v105_v23 = vsel %vm103_vm5, %v102_v18, %v100_v19 }
  0x7e   :  { %v106_v26 = vmul.f32 %v1238_v16, %v105_v23  ;;  %v171_v30 = vrot.slane %v104_v22, 4 }
  0x80   :  { %v111_v31 = vpop.permute.xlu1 %110  ;;  %v109_v32 = vpop.permute.xlu0 %108  ;;  %v170_v38 = vrot.slane %v106_v26, 4  ;;  %v194_v46 = vsel %vm192_vm9, %v98_v33, %v171_v30 }
  0x81   :  { %v113_v35 = vsel %vm112_vm7, %v109_v32, %v111_v31  ;;  %v114_v36 = vsel %vm112_vm7, %v111_v31, %v109_v32 }
  0x82   :  { %v115_v39 = vmul.f32 %v1238_v16, %v114_v36  ;;  %v118_v40 = vmul.f32 %v1258_v28, %v113_v35  ;;  %v193_v49 = vsel %vm192_vm9, %v97_v41, %v170_v38 }
  0x84   :  { %v117_v43 = vmul.f32 %v1263_v34, %v115_v39  ;;  %v131_v44 = vpop.permute.xlu1 %130  ;;  %v129_v45 = vpop.permute.xlu0 %128  ;;  %v196_v47 = vsel %vm192_vm9, %v118_v40, %v177_v37 }
  0x85   :  { %v1001_v48 = vpack.c.bf16 %v196_v47, %v194_v46  ;;  %v134_v51 = vsel %vm132_vm10, %v131_v44, %v129_v45  ;;  %v133_v53 = vsel %vm132_vm10, %v129_v45, %v131_v44 }
  0x86   :  { %v195_v50 = vsel %vm192_vm9, %v117_v43, %v176_v42  ;;  %v136_v58 = vmul.f32 %v1258_v28, %v134_v51  ;;  %v135_v59 = vmul.f32 %v1263_v34, %v133_v53 }
  0x87   :  { %1002 = vmatprep.subr.bf16.mxu0 %v1001_v48  ;;  %v1003_v52 = vpack.c.bf16 %v195_v50, %v193_v49 }
  0x88   :  { %v140_v54 = vpop.permute.xlu1 %139  ;;  %v138_v55 = vpop.permute.xlu0 %137  ;;  %v183_v8 = vrot.slane %v136_v58, 4  ;;  %v182_v11 = vrot.slane %v135_v59, 4 }
  0x89   :  { %v143_v57 = vsel %vm141_vm12, %v140_v54, %v138_v55  ;;  %1004 = vmatpush1.bf16.msra.mxu0 %v1003_v52  ;;  %v142_v60 = vsel %vm141_vm12, %v138_v55, %v140_v54 }
  0x8a   :  { %v145_v61 = vmul.f32 %v1285_v56, %v143_v57  ;;  %v146_v12 = vmul.f32 %v1244_v20, %v142_v60  ;;  %v198_v21 = vsel %vm192_vm9, %v1148_v1, %v183_v8  ;;  %v197_v24 = vsel %vm192_vm9, %v1140_v0, %v182_v11  ;;  %v1319_v0 = vld [vmem:[%s1643_s1] sm:$0xf] }
  0x8c   :  { %v151_v62 = vpop.permute.xlu1 %150  ;;  %v149_v63 = vpop.permute.xlu0 %148  ;;  %v147_v13 = vmul.f32 %v1233_v14, %v145_v61 }
  0x8d   :  { %v153_v5 = vsel %vm152_vm13, %v149_v63, %v151_v62  ;;  %v154_v7 = vsel %vm152_vm13, %v151_v62, %v149_v63 }
  0x8e   :  { %v156_v9 = vmul.f32 %v1285_v56, %v154_v7  ;;  %v188_v10 = vrot.slane %v153_v5, 4 }
  0x90   :  { %v189_v15 = vrot.slane %v156_v9, 4  ;;  %v578_v17 = vpop.permute.xlu1 %577  ;;  %v576_v18 = vpop.permute.xlu0 %575  ;;  %v199_v19 = vsel %vm192_vm9, %v146_v12, %v188_v10 }
  0x91   :  { %v1007_v27 = vpack.c.bf16 %v199_v19, %v197_v24  ;;  %v579_v36 = vsel %vm123_vm1, %v576_v18, %v578_v17  ;;  %v580_v37 = vsel %vm123_vm1, %v578_v17, %v576_v18 }
  0x92   :  { %v200_v22 = vsel %vm192_vm9, %v147_v13, %v189_v15  ;;  %v582_v40 = vmul.f32 %v1233_v14, %v579_v36  ;;  %v581_v45 = vmul.f32 %v1244_v20, %v580_v37 }
  0x93   :  { %v1005_v23 = vpack.c.bf16 %v200_v22, %v198_v21 }
  0x94   :  { %v160_v25 = vpop.permute.xlu1 %159  ;;  %v158_v26 = vpop.permute.xlu0 %157  ;;  %v628_v51 = vrot.slane %v582_v40, 4  ;;  %v627_v59 = vrot.slane %v581_v45, 4 }
  0x95   :  { %v163_v29 = vsel %vm161_vm14, %v160_v25, %v158_v26  ;;  %1006 = vmatprep.subr.bf16.mxu0 %v1005_v23  ;;  %v162_v30 = vsel %vm161_vm14, %v158_v26, %v160_v25 }
  0x96   :  { %v165_v31 = vmul.f32 %v1285_v56, %v163_v29  ;;  %1008 = vmatpush1.bf16.msra.mxu0 %v1007_v27  ;;  %v166_v35 = vmul.f32 %v1263_v34, %v162_v30 }
  0x98   :  { %v167_v1 = vmul.f32 %v1258_v28, %v165_v31  ;;  %v550_v32 = vpop.permute.xlu1 %549  ;;  %v548_v33 = vpop.permute.xlu0 %547 }
  0x99   :  { %v552_v41 = vsel %vm92_vm3, %v550_v32, %v548_v33  ;;  %v551_v46 = vsel %vm92_vm3, %v548_v33, %v550_v32 }
  0x9a   :  { %988 = vmatprep.subr.msk.mxu0 %vm192_vm9, %v167_v1  ;;  %v553_v47 = vmul.f32 %v1238_v16, %v552_v41  ;;  %v556_v54 = vmul.f32 %v1233_v14, %v551_v46 }
  0x9b   :  { %989 = vmatpush1.msk.msra.mxu0 %vm192_vm9, %v166_v35 }
  0x9c   :  { %v560_v38 = vpop.permute.xlu1 %559  ;;  %v558_v39 = vpop.permute.xlu0 %557  ;;  %990 = vmatmul.mubr.msk.f32.vlgmr.msra.gmra.mrb[0].mxu0 %vm201_vm15, %v1319_v0  ;;  %v555_v60 = vmul.f32 %v1244_v20, %v553_v47 }
  0x9d   :  { %v561_v42 = vsel %vm103_vm5, %v558_v39, %v560_v38  ;;  %v562_v43 = vsel %vm103_vm5, %v560_v38, %v558_v39  ;;  %721 = vmatprep.mubr.f32.mxu0 %v1086_v2 }
  0x9e   :  { %v563_v44 = vmul.f32 %v1238_v16, %v562_v43  ;;  %v622_v48 = vrot.slane %v561_v42, 4 }
  0xa0   :  { %v568_v49 = vpop.permute.xlu1 %567  ;;  %v566_v50 = vpop.permute.xlu0 %565  ;;  %v621_v55 = vrot.slane %v563_v44, 4  ;;  %v644_v5 = vsel %vm192_vm9, %v556_v54, %v622_v48 }
  0xa1   :  { %v569_v52 = vsel %vm112_vm7, %v566_v50, %v568_v49  ;;  %v570_v53 = vsel %vm112_vm7, %v568_v49, %v566_v50 }
  0xa2   :  { %v571_v57 = vmul.f32 %v1238_v16, %v570_v53  ;;  %v574_v58 = vmul.f32 %v1258_v28, %v569_v52  ;;  %v643_v9 = vsel %vm192_vm9, %v555_v60, %v621_v55 }
  0xa4   :  { %v573_v61 = vmul.f32 %v1263_v34, %v571_v57  ;;  %v586_v62 = vpop.permute.xlu1 %585  ;;  %v584_v63 = vpop.permute.xlu0 %583  ;;  %v646_v7 = vsel %vm192_vm9, %v574_v58, %v628_v51  ;;  %v1093_v58 = vmov 0  }
  0xa5   :  { %v1017_v8 = vpack.c.bf16 %v646_v7, %v644_v5  ;;  %v588_v11 = vsel %vm132_vm10, %v586_v62, %v584_v63  ;;  %v587_v13 = vsel %vm132_vm10, %v584_v63, %v586_v62  ;;  %1046 = vset.pattern.permute.xlu1 %v1093_v58  ;;  %1047 = vset.pattern.permute.xlu0 %v1093_v58 }
  0xa6   :  { %v645_v10 = vsel %vm192_vm9, %v573_v61, %v627_v59  ;;  %v590_v19 = vmul.f32 %v1258_v28, %v588_v11  ;;  %v589_v21 = vmul.f32 %v1263_v34, %v587_v13 }
  0xa7   :  { %1018 = vmatprep.subr.bf16.mxu0 %v1017_v8  ;;  %v1019_v12 = vpack.c.bf16 %v645_v10, %v643_v9 }
  0xa8   :  { %v594_v15 = vpop.permute.xlu1 %593  ;;  %v592_v17 = vpop.permute.xlu0 %591  ;;  %v634_v29 = vrot.slane %v590_v19, 4  ;;  %v633_v1 = vrot.slane %v589_v21, 4 }
  0xa9   :  { %v596_v18 = vsel %vm141_vm12, %v594_v15, %v592_v17  ;;  %1020 = vmatpush1.bf16.msra.mxu0 %v1019_v12  ;;  %v595_v22 = vsel %vm141_vm12, %v592_v17, %v594_v15 }
  0xaa   :  { %v598_v23 = vmul.f32 %v1285_v56, %v596_v18  ;;  %v599_v32 = vmul.f32 %v1244_v20, %v595_v22  ;;  %v648_v41 = vsel %vm192_vm9, %v1183_v4, %v634_v29  ;;  %v647_v43 = vsel %vm192_vm9, %v1175_v3, %v633_v1  ;;  %v81_v22 = vld [vmem:[%s1645_s3] sm:$0xf] }
  0xac   :  { %v604_v24 = vpop.permute.xlu1 %603  ;;  %v602_v25 = vpop.permute.xlu0 %601  ;;  %v600_v33 = vmul.f32 %v1233_v14, %v598_v23 }
  0xad   :  { %v605_v26 = vsel %vm152_vm13, %v602_v25, %v604_v24  ;;  %v606_v27 = vsel %vm152_vm13, %v604_v24, %v602_v25 }
  0xae   :  { %v608_v30 = vmul.f32 %v1285_v56, %v606_v27  ;;  %v639_v31 = vrot.slane %v605_v26, 4 }
  0xb0   :  { %v640_v35 = vrot.slane %v608_v30, 4  ;;  %v612_v36 = vpop.permute.xlu1 %611  ;;  %v610_v37 = vpop.permute.xlu0 %609  ;;  %v649_v38 = vsel %vm192_vm9, %v599_v32, %v639_v31 }
  0xb1   :  { %v614_v39 = vsel %vm161_vm14, %v612_v36, %v610_v37  ;;  %v1023_v46 = vpack.c.bf16 %v649_v38, %v647_v43  ;;  %v613_v47 = vsel %vm161_vm14, %v610_v37, %v612_v36 }
  0xb2   :  { %v616_v40 = vmul.f32 %v1285_v56, %v614_v39  ;;  %v650_v42 = vsel %vm192_vm9, %v600_v33, %v640_v35  ;;  %v617_v48 = vmul.f32 %v1263_v34, %v613_v47 }
  0xb3   :  { %v1021_v44 = vpack.c.bf16 %v650_v42, %v648_v41 }
  0xb4   :  { %v618_v45 = vmul.f32 %v1258_v28, %v616_v40 }
  0xb5   :  { %1022 = vmatprep.subr.bf16.mxu0 %v1021_v44 }
  0xb6   :  { %1024 = vmatpush1.bf16.msra.mxu0 %v1023_v46 }
  0xb7   :  { %995 = vmatprep.subr.msk.mxu0 %vm192_vm9, %v618_v45 }
  0xba   :  { %996 = vmatpush1.msk.msra.mxu0 %vm192_vm9, %v617_v48 }
  0xbb   :  { %997 = vmatmul.mubr.msk.f32.vlgmr.msra.gmra.mrb[2].mxu0 %vm201_vm15, %v1319_v0  ;;  %v80_v0 = vld [vmem:[%s1644_s2] sm:$0xf] }
 0x16f   :  { %v277_v4 = vpop.f32.mrb[0].mxu0 }
 0x170   :  { %v282_v3 = vsel %vm192_vm9, %v277_v4, 0.0  ;;  %v279_v49 = vpop.f32.mrb[1].mxu0 }
 0x171   :  { %v283_v50 = vsel %vm192_vm9, %v279_v49, 0.0 }
 0x172   :  { %v284_v51 = vadd.f32 %v283_v50, %v282_v3 }
 0x174   :  { %285 = vadd.xlane.f32.xlu0 %v284_v51 }
 0x18e   :  { %v723_v52 = vpop.f32.mrb[2].mxu0 }
 0x18f   :  { %v728_v53 = vsel %vm192_vm9, %v723_v52, 0.0  ;;  %v725_v54 = vpop.f32.mrb[3].mxu0 }
 0x190   :  { %v729_v55 = vsel %vm192_vm9, %v725_v54, 0.0 }
 0x191   :  { %v730_v57 = vadd.f32 %v729_v55, %v728_v53 }
 0x193   :  { %731 = vadd.xlane.f32.xlu1 %v730_v57 }
 0x1a4   :  { %304 = vperm.xlu1 %1046, %v80_v0  }
 0x201   :  { %v286_v59 = vpop.xlane.xlu0 %285 }
 0x202   :  { %v287_v60 = vmul.f32 0.00390625, %v286_v59 }
 0x204   :  { %v288_v61 = vsub.f32 %v277_v4, %v287_v60  ;;  %v289_v62 = vsub.f32 %v279_v49, %v287_v60 }
 0x206   :  { %v290_v63 = vmul.f32 %v288_v61, %v288_v61  ;;  %v291_v5 = vmul.f32 %v289_v62, %v289_v62 }
 0x208   :  { %v292_v7 = vsel %vm192_vm9, %v290_v63, 0.0  ;;  %v293_v8 = vsel %vm192_vm9, %v291_v5, 0.0 }
 0x209   :  { %v294_v9 = vadd.f32 %v293_v8, %v292_v7 }
 0x20b   :  { %295 = vadd.xlane.f32.xlu0 %v294_v9 }
 0x220   :  { %v732_v10 = vpop.xlane.xlu1 %731 }
 0x221   :  { %v733_v11 = vmul.f32 0.00390625, %v732_v10 }
 0x223   :  { %v734_v12 = vsub.f32 %v723_v52, %v733_v11  ;;  %v735_v13 = vsub.f32 %v725_v54, %v733_v11 }
 0x224   :  { %v305_v1 = vpop.permute.xlu1 %304 }
 0x225   :  { %v736_v15 = vmul.f32 %v734_v12, %v734_v12  ;;  %v737_v17 = vmul.f32 %v735_v13, %v735_v13 }
 0x227   :  { %v738_v18 = vsel %vm192_vm9, %v736_v15, 0.0  ;;  %v739_v19 = vsel %vm192_vm9, %v737_v17, 0.0 }
 0x228   :  { %v740_v21 = vadd.f32 %v739_v19, %v738_v18 }
 0x22a   :  { %741 = vadd.xlane.f32.xlu0 %v740_v21 }
 0x240   :  { %311 = vperm.xlu0 %1047, %v81_v22  }
 0x298   :  { %v296_v23 = vpop.xlane.xlu0 %295 }
 0x299   :  { %v297_v24 = vmul.f32 0.00390625, %v296_v23 }
 0x29b   :  { %v298_v25 = vadd.f32 1e-05, %v297_v24 }
 0x29d   :  { %1050 = vrsqrt.f32 %v298_v25 }
 0x2a7   :  { %v1051_v26 = vpop.eup %1050 }
 0x2a8   :  { %v300_v30 = vmul.f32 %v1051_v26, %v288_v61  ;;  %v301_v32 = vmul.f32 %v1051_v26, %v289_v62 }
 0x2aa   :  { %v307_v33 = vmul.f32 %v305_v1, %v300_v30  ;;  %v308_v36 = vmul.f32 %v305_v1, %v301_v32 }
 0x2b7   :  { %v742_v27 = vpop.xlane.xlu0 %741 }
 0x2b8   :  { %v743_v29 = vmul.f32 0.00390625, %v742_v27 }
 0x2ba   :  { %v744_v31 = vadd.f32 1e-05, %v743_v29 }
 0x2bc   :  { %1052 = vrsqrt.f32 %v744_v31 }
 0x2bf   :  { %v312_v35 = vpop.permute.xlu0 %311 }
 0x2c0   :  { %v314_v37 = vadd.f32 %v312_v35, %v307_v33  ;;  %v315_v38 = vadd.f32 %v312_v35, %v308_v36 }
 0x2c2   :  { %v1404_v39 = vmax.f32 %v314_v37, 0.0  ;;  %v1410_v41 = vmax.f32 %v315_v38, 0.0 }
 0x2c4   :  { %354 = vrot.lane.b32.xlu0 %v1404_v39, %s1089_s30  ;;  %346 = vrot.lane.b32.xlu1 %v1404_v39, %s1085_s27 }
 0x2c6   :  { %v1053_v40 = vpop.eup %1052 }
 0x2c7   :  { %v746_v42 = vmul.f32 %v1053_v40, %v734_v12  ;;  %v747_v46 = vmul.f32 %v1053_v40, %v735_v13 }
 0x2c8   :  { %362 = vrot.lane.b32.xlu0 %v1404_v39, %s1090_s8  ;;  %348 = vrot.lane.b32.xlu1 %v1410_v41, %s1085_s27 }
 0x2c9   :  { %v748_v43 = vmul.f32 %v746_v42, %v305_v1  ;;  %v749_v47 = vmul.f32 %v747_v46, %v305_v1 }
 0x2cb   :  { %v750_v44 = vadd.f32 %v748_v43, %v312_v35  ;;  %v751_v48 = vadd.f32 %v749_v47, %v312_v35 }
 0x2cc   :  { %372 = vrot.lane.b32.xlu0 %v1404_v39, %s1091_s11  ;;  %318 = vrot.lane.b32.xlu1 %v1404_v39, %s1084_s26 }
 0x2cd   :  { %v1424_v45 = vmax.f32 %v750_v44, 0.0  ;;  %v1458_v4 = vmax.f32 %v751_v48, 0.0 }
 0x2d0   :  { %380 = vrot.lane.b32.xlu0 %v1404_v39, %s1092_s12  ;;  %320 = vrot.lane.b32.xlu1 %v1410_v41, %s1084_s26 }
 0x2d4   :  { %328 = vrot.lane.b32.xlu1 %v1404_v39, %s1087_s28  ;;  %782 = vrot.lane.b32.xlu0 %v1424_v45, %s1085_s27 }
 0x2d8   :  { %330 = vrot.lane.b32.xlu1 %v1410_v41, %s1087_s28  ;;  %754 = vrot.lane.b32.xlu0 %v1424_v45, %s1084_s26 }
 0x2dc   :  { %336 = vrot.lane.b32.xlu1 %v1404_v39, %s1088_s29  ;;  %764 = vrot.lane.b32.xlu0 %v1424_v45, %s1087_s28 }
 0x2e0   :  { %338 = vrot.lane.b32.xlu1 %v1410_v41, %s1088_s29  ;;  %772 = vrot.lane.b32.xlu0 %v1424_v45, %s1088_s29 }
 0x2e4   :  { %356 = vrot.lane.b32.xlu1 %v1410_v41, %s1089_s30  ;;  %790 = vrot.lane.b32.xlu0 %v1424_v45, %s1089_s30 }
 0x2e8   :  { %364 = vrot.lane.b32.xlu1 %v1410_v41, %s1090_s8  ;;  %798 = vrot.lane.b32.xlu0 %v1424_v45, %s1090_s8 }
 0x2ec   :  { %374 = vrot.lane.b32.xlu1 %v1410_v41, %s1091_s11  ;;  %808 = vrot.lane.b32.xlu0 %v1424_v45, %s1091_s11 }
 0x2f0   :  { %382 = vrot.lane.b32.xlu1 %v1410_v41, %s1092_s12  ;;  %816 = vrot.lane.b32.xlu0 %v1424_v45, %s1092_s12 }
 0x2f4   :  { %784 = vrot.lane.b32.xlu1 %v1458_v4, %s1085_s27 }
 0x2f8   :  { %756 = vrot.lane.b32.xlu1 %v1458_v4, %s1084_s26 }
 0x2fc   :  { %766 = vrot.lane.b32.xlu1 %v1458_v4, %s1087_s28 }
 0x300   :  { %774 = vrot.lane.b32.xlu1 %v1458_v4, %s1088_s29 }
 0x304   :  { %792 = vrot.lane.b32.xlu1 %v1458_v4, %s1089_s30 }
 0x308   :  { %800 = vrot.lane.b32.xlu1 %v1458_v4, %s1090_s8 }
 0x30c   :  { %810 = vrot.lane.b32.xlu1 %v1458_v4, %s1091_s11 }
 0x310   :  { %818 = vrot.lane.b32.xlu1 %v1458_v4, %s1092_s12 }
 0x336   :  { %v347_v3 = vpop.permute.xlu1 %346  ;;  %v355_v51 = vpop.permute.xlu0 %354 }
 0x33a   :  { %v349_v49 = vpop.permute.xlu1 %348  ;;  %v363_v53 = vpop.permute.xlu0 %362 }
 0x33b   :  { %v350_v57 = vsel %vm123_vm1, %v347_v3, %v349_v49  ;;  %v351_v59 = vsel %vm123_vm1, %v349_v49, %v347_v3 }
 0x33c   :  { %v353_v61 = vmul.f32 %v1233_v14, %v350_v57  ;;  %v352_v7 = vmul.f32 %v1244_v20, %v351_v59 }
 0x33e   :  { %v319_v50 = vpop.permute.xlu1 %318  ;;  %v373_v0 = vpop.permute.xlu0 %372  ;;  %v399_v13 = vrot.slane %v353_v61, 4  ;;  %v398_v23 = vrot.slane %v352_v7, 4 }
 0x342   :  { %v321_v52 = vpop.permute.xlu1 %320  ;;  %v381_v9 = vpop.permute.xlu0 %380 }
 0x343   :  { %v323_v62 = vsel %vm92_vm3, %v321_v52, %v319_v50  ;;  %v322_v8 = vsel %vm92_vm3, %v319_v50, %v321_v52 }
 0x344   :  { %v324_v10 = vmul.f32 %v1238_v16, %v323_v62  ;;  %v327_v18 = vmul.f32 %v1233_v14, %v322_v8 }
 0x346   :  { %v329_v54 = vpop.permute.xlu1 %328  ;;  %v326_v24 = vmul.f32 %v1244_v20, %v324_v10  ;;  %v783_v31 = vpop.permute.xlu0 %782 }
 0x34a   :  { %v331_v55 = vpop.permute.xlu1 %330  ;;  %v755_v43 = vpop.permute.xlu0 %754 }
 0x34b   :  { %v333_v58 = vsel %vm103_vm5, %v331_v55, %v329_v54  ;;  %v332_v63 = vsel %vm103_vm5, %v329_v54, %v331_v55 }
 0x34c   :  { %v334_v5 = vmul.f32 %v1238_v16, %v333_v58  ;;  %v393_v11 = vrot.slane %v332_v63, 4 }
 0x34e   :  { %v337_v60 = vpop.permute.xlu1 %336  ;;  %v392_v19 = vrot.slane %v334_v5, 4  ;;  %v415_v27 = vsel %vm192_vm9, %v327_v18, %v393_v11 }
 0x350   :  { %v414_v1 = vsel %vm192_vm9, %v326_v24, %v392_v19 }
 0x352   :  { %v339_v12 = vpop.permute.xlu1 %338 }
 0x353   :  { %v340_v15 = vsel %vm112_vm7, %v337_v60, %v339_v12  ;;  %v341_v17 = vsel %vm112_vm7, %v339_v12, %v337_v60  ;;  %v765_v60 = vpop.permute.xlu0 %764 }
 0x354   :  { %v342_v21 = vmul.f32 %v1238_v16, %v341_v17  ;;  %v345_v22 = vmul.f32 %v1258_v28, %v340_v15  ;;  %v1540_v15 = vld [vmem:[%s1646_s4] sm:$0xf] }
 0x356   :  { %v344_v25 = vmul.f32 %v1263_v34, %v342_v21  ;;  %v357_v26 = vpop.permute.xlu1 %356  ;;  %v417_v29 = vsel %vm192_vm9, %v345_v22, %v399_v13 }
 0x357   :  { %v1009_v30 = vpack.c.bf16 %v417_v29, %v415_v27  ;;  %v359_v33 = vsel %vm132_vm10, %v357_v26, %v355_v51  ;;  %v358_v36 = vsel %vm132_vm10, %v355_v51, %v357_v26  ;;  %v773_v12 = vpop.permute.xlu0 %772 }
 0x358   :  { %v416_v32 = vsel %vm192_vm9, %v344_v25, %v398_v23  ;;  %v361_v40 = vmul.f32 %v1258_v28, %v359_v33  ;;  %v360_v42 = vmul.f32 %v1263_v34, %v358_v36 }
 0x359   :  { %1010 = vmatprep.subr.bf16.mxu1 %v1009_v30  ;;  %v1011_v35 = vpack.c.bf16 %v416_v32, %v414_v1 }
 0x35a   :  { %v365_v37 = vpop.permute.xlu1 %364  ;;  %v405_v49 = vrot.slane %v361_v40, 4  ;;  %v404_v52 = vrot.slane %v360_v42, 4 }
 0x35b   :  { %v367_v38 = vsel %vm141_vm12, %v365_v37, %v363_v53  ;;  %1012 = vmatpush1.bf16.msra.mxu1 %v1011_v35  ;;  %v366_v44 = vsel %vm141_vm12, %v363_v53, %v365_v37  ;;  %v791_v23 = vpop.permute.xlu0 %790 }
 0x35c   :  { %v369_v46 = vmul.f32 %v1285_v56, %v367_v38  ;;  %v370_v54 = vmul.f32 %v1244_v20, %v366_v44  ;;  %v418_v5 = vsel %vm192_vm9, %v1404_v39, %v404_v52 }
 0x35e   :  { %v375_v47 = vpop.permute.xlu1 %374  ;;  %v371_v55 = vmul.f32 %v1233_v14, %v369_v46 }
 0x35f   :  { %v376_v48 = vsel %vm152_vm13, %v373_v0, %v375_v47  ;;  %v377_v3 = vsel %vm152_vm13, %v375_v47, %v373_v0  ;;  %v419_v0 = vsel %vm192_vm9, %v1410_v41, %v405_v49  ;;  %v799_v38 = vpop.permute.xlu0 %798 }
 0x360   :  { %v379_v50 = vmul.f32 %v1285_v56, %v377_v3  ;;  %v410_v51 = vrot.slane %v376_v48, 4 }
 0x362   :  { %v411_v57 = vrot.slane %v379_v50, 4  ;;  %v383_v53 = vpop.permute.xlu1 %382  ;;  %v420_v59 = vsel %vm192_vm9, %v370_v54, %v410_v51 }
 0x363   :  { %v385_v58 = vsel %vm161_vm14, %v383_v53, %v381_v9  ;;  %v1015_v10 = vpack.c.bf16 %v420_v59, %v418_v5  ;;  %v384_v11 = vsel %vm161_vm14, %v381_v9, %v383_v53  ;;  %v809_v54 = vpop.permute.xlu0 %808 }
 0x364   :  { %v387_v61 = vmul.f32 %v1285_v56, %v385_v58  ;;  %v421_v62 = vsel %vm192_vm9, %v371_v55, %v411_v57  ;;  %v388_v41 = vmul.f32 %v1263_v34, %v384_v11 }
 0x365   :  { %v1013_v63 = vpack.c.bf16 %v421_v62, %v419_v0 }
 0x366   :  { %v389_v7 = vmul.f32 %v1258_v28, %v387_v61  ;;  %v785_v8 = vpop.permute.xlu1 %784 }
 0x367   :  { %1014 = vmatprep.subr.bf16.mxu1 %v1013_v63  ;;  %v786_v39 = vsel %vm123_vm1, %v783_v31, %v785_v8  ;;  %v787_v9 = vsel %vm123_vm1, %v785_v8, %v783_v31  ;;  %v817_v8 = vpop.permute.xlu0 %816 }
 0x368   :  { %1016 = vmatpush1.bf16.msra.mxu1 %v1015_v10  ;;  %v789_v18 = vmul.f32 %v1233_v14, %v786_v39  ;;  %v788_v25 = vmul.f32 %v1244_v20, %v787_v9 }
 0x369   :  { %991 = vmatprep.subr.msk.mxu1 %vm192_vm9, %v389_v7 }
 0x36a   :  { %v757_v13 = vpop.permute.xlu1 %756  ;;  %v835_v30 = vrot.slane %v789_v18, 4  ;;  %v834_v37 = vrot.slane %v788_v25, 4 }
 0x36b   :  { %v759_v19 = vsel %vm92_vm3, %v757_v13, %v755_v43  ;;  %v758_v26 = vsel %vm92_vm3, %v755_v43, %v757_v13 }
 0x36c   :  { %992 = vmatpush1.msk.msra.mxu1 %vm192_vm9, %v388_v41  ;;  %v763_v32 = vmul.f32 %v1233_v14, %v758_v26 }
 0x36d   :  { %993 = vmatmul.mubr.msk.f32.vlgmr.msra.gmra.mrb[0].mxu1 %vm201_vm15, %v1540_v15 }
 0x36e   :  { %v767_v17 = vpop.permute.xlu1 %766  ;;  %928 = vmatprep.mubr.f32.mxu1 %v1086_v2  ;;  %v760_v2 = vmul.f32 %v1238_v16, %v759_v19 }
 0x36f   :  { %v768_v21 = vsel %vm103_vm5, %v765_v60, %v767_v17  ;;  %v769_v22 = vsel %vm103_vm5, %v767_v17, %v765_v60 }
 0x370   :  { %v770_v24 = vmul.f32 %v1238_v16, %v769_v22  ;;  %v829_v27 = vrot.slane %v768_v21, 4  ;;  %v762_v40 = vmul.f32 %v1244_v20, %v760_v2 }
 0x372   :  { %v775_v29 = vpop.permute.xlu1 %774  ;;  %v828_v33 = vrot.slane %v770_v24, 4  ;;  %v851_v44 = vsel %vm192_vm9, %v763_v32, %v829_v27 }
 0x373   :  { %v776_v31 = vsel %vm112_vm7, %v773_v12, %v775_v29  ;;  %v777_v1 = vsel %vm112_vm7, %v775_v29, %v773_v12 }
 0x374   :  { %v778_v35 = vmul.f32 %v1238_v16, %v777_v1  ;;  %v781_v36 = vmul.f32 %v1258_v28, %v776_v31  ;;  %v850_v48 = vsel %vm192_vm9, %v762_v40, %v828_v33 }
 0x376   :  { %v780_v42 = vmul.f32 %v1263_v34, %v778_v35  ;;  %v793_v43 = vpop.permute.xlu1 %792  ;;  %v853_v46 = vsel %vm192_vm9, %v781_v36, %v835_v30 }
 0x377   :  { %v1025_v47 = vpack.c.bf16 %v853_v46, %v851_v44  ;;  %v795_v16 = vsel %vm132_vm10, %v793_v43, %v791_v23  ;;  %v794_v50 = vsel %vm132_vm10, %v791_v23, %v793_v43 }
 0x378   :  { %v852_v3 = vsel %vm192_vm9, %v780_v42, %v834_v37  ;;  %v797_v55 = vmul.f32 %v1258_v28, %v795_v16  ;;  %v796_v57 = vmul.f32 %v1263_v34, %v794_v50 }
 0x379   :  { %1026 = vmatprep.subr.bf16.mxu1 %v1025_v47  ;;  %v1027_v49 = vpack.c.bf16 %v852_v3, %v850_v48  ;;  %v83_v48 = vld [vmem:[%s1648_s6] sm:$0xf] }
 0x37a   :  { %v801_v51 = vpop.permute.xlu1 %800  ;;  %v841_v0 = vrot.slane %v797_v55, 4  ;;  %v840_v5 = vrot.slane %v796_v57, 4 }
 0x37b   :  { %v803_v52 = vsel %vm141_vm12, %v801_v51, %v799_v38  ;;  %1028 = vmatpush1.bf16.msra.mxu1 %v1027_v49  ;;  %v802_v53 = vsel %vm141_vm12, %v799_v38, %v801_v51 }
 0x37c   :  { %v805_v58 = vmul.f32 %v1285_v56, %v803_v52  ;;  %v806_v7 = vmul.f32 %v1244_v20, %v802_v53  ;;  %v855_v9 = vsel %vm192_vm9, %v1458_v4, %v841_v0  ;;  %v854_v20 = vsel %vm192_vm9, %v1424_v45, %v840_v5 }
 0x37e   :  { %v811_v59 = vpop.permute.xlu1 %810  ;;  %v807_v10 = vmul.f32 %v1233_v14, %v805_v58 }
 0x37f   :  { %v812_v60 = vsel %vm152_vm13, %v809_v54, %v811_v59  ;;  %v813_v61 = vsel %vm152_vm13, %v811_v59, %v809_v54 }
 0x380   :  { %v815_v62 = vmul.f32 %v1285_v56, %v813_v61  ;;  %v846_v63 = vrot.slane %v812_v60, 4 }
 0x382   :  { %v847_v11 = vrot.slane %v815_v62, 4  ;;  %v819_v12 = vpop.permute.xlu1 %818  ;;  %v856_v41 = vsel %vm192_vm9, %v806_v7, %v846_v63  ;;  %v1058_v63 = vld [vmem:[%s1642_s0] sm:$0xff] }
 0x383   :  { %v821_v13 = vsel %vm161_vm14, %v819_v12, %v817_v8  ;;  %v1031_v19 = vpack.c.bf16 %v856_v41, %v854_v20  ;;  %v820_v21 = vsel %vm161_vm14, %v817_v8, %v819_v12 }
 0x384   :  { %v823_v39 = vmul.f32 %v1285_v56, %v821_v13  ;;  %v857_v17 = vsel %vm192_vm9, %v807_v10, %v847_v11  ;;  %v824_v56 = vmul.f32 %v1263_v34, %v820_v21 }
 0x385   :  { %v1029_v18 = vpack.c.bf16 %v857_v17, %v855_v9  ;;  %v1059_v9 = vld [vmem:[%s1642_s0 + $0x8] sm:$0xff] }
 0x386   :  { %v825_v14 = vmul.f32 %v1258_v28, %v823_v39 }
 0x387   :  { %1030 = vmatprep.subr.bf16.mxu1 %v1029_v18 }
 0x388   :  { %1032 = vmatpush1.bf16.msra.mxu1 %v1031_v19 }
 0x389   :  { %998 = vmatprep.subr.msk.mxu1 %vm192_vm9, %v825_v14 }
 0x38c   :  { %999 = vmatpush1.msk.msra.mxu1 %vm192_vm9, %v824_v56 }
 0x38d   :  { %1000 = vmatmul.mubr.msk.f32.vlgmr.msra.gmra.mrb[2].mxu1 %vm201_vm15, %v1540_v15  ;;  %v82_v15 = vld [vmem:[%s1647_s5] sm:$0xf] }
 0x440   :  { %v497_v4 = vpop.f32.mrb[0].mxu1 }
 0x441   :  { %v502_v45 = vsel %vm192_vm9, %v497_v4, 0.0  ;;  %v499_v22 = vpop.f32.mrb[1].mxu1 }
 0x442   :  { %v503_v28 = vsel %vm192_vm9, %v499_v22, 0.0 }
 0x443   :  { %v504_v23 = vadd.f32 %v503_v28, %v502_v45 }
 0x445   :  { %505 = vadd.xlane.f32.xlu0 %v504_v23 }
 0x460   :  { %v930_v6 = vpop.f32.mrb[2].mxu1 }
 0x461   :  { %v935_v24 = vsel %vm192_vm9, %v930_v6, 0.0  ;;  %v932_v25 = vpop.f32.mrb[3].mxu1 }
 0x462   :  { %v936_v26 = vsel %vm192_vm9, %v932_v25, 0.0 }
 0x463   :  { %v937_v34 = vadd.f32 %v936_v26, %v935_v24 }
 0x465   :  { %938 = vadd.xlane.f32.xlu1 %v937_v34 }
 0x476   :  { %524 = vperm.xlu1 %1046, %v82_v15  }
 0x4d2   :  { %v506_v2 = vpop.xlane.xlu0 %505 }
 0x4d3   :  { %v507_v27 = vmul.f32 0.00390625, %v506_v2 }
 0x4d5   :  { %v508_v29 = vsub.f32 %v497_v4, %v507_v27  ;;  %v509_v30 = vsub.f32 %v499_v22, %v507_v27 }
 0x4d7   :  { %v510_v31 = vmul.f32 %v508_v29, %v508_v29  ;;  %v511_v1 = vmul.f32 %v509_v30, %v509_v30 }
 0x4d9   :  { %v512_v32 = vsel %vm192_vm9, %v510_v31, 0.0  ;;  %v513_v33 = vsel %vm192_vm9, %v511_v1, 0.0 }
 0x4da   :  { %v514_v35 = vadd.f32 %v513_v33, %v512_v32 }
 0x4dc   :  { %515 = vadd.xlane.f32.xlu0 %v514_v35 }
 0x4f2   :  { %v939_v36 = vpop.xlane.xlu1 %938 }
 0x4f3   :  { %v940_v37 = vmul.f32 0.00390625, %v939_v36 }
 0x4f5   :  { %v941_v38 = vsub.f32 %v930_v6, %v940_v37  ;;  %v942_v40 = vsub.f32 %v932_v25, %v940_v37 }
 0x4f6   :  { %v525_v53 = vpop.permute.xlu1 %524 }
 0x4f7   :  { %v943_v42 = vmul.f32 %v941_v38, %v941_v38  ;;  %v944_v43 = vmul.f32 %v942_v40, %v942_v40 }
 0x4f9   :  { %v945_v44 = vsel %vm192_vm9, %v943_v42, 0.0  ;;  %v946_v46 = vsel %vm192_vm9, %v944_v43, 0.0 }
 0x4fa   :  { %v947_v47 = vadd.f32 %v946_v46, %v945_v44 }
 0x4fc   :  { %948 = vadd.xlane.f32.xlu0 %v947_v47 }
 0x512   :  { %531 = vperm.xlu0 %1047, %v83_v48  }
 0x569   :  { %v516_v3 = vpop.xlane.xlu0 %515 }
 0x56a   :  { %v517_v16 = vmul.f32 0.00390625, %v516_v3 }
 0x56c   :  { %v518_v49 = vadd.f32 1e-05, %v517_v16 }
 0x56e   :  { %1054 = vrsqrt.f32 %v518_v49 }
 0x578   :  { %v1055_v50 = vpop.eup %1054 }
 0x579   :  { %v520_v55 = vmul.f32 %v1055_v50, %v508_v29  ;;  %v521_v57 = vmul.f32 %v1055_v50, %v509_v30 }
 0x57b   :  { %v527_v58 = vmul.f32 %v525_v53, %v520_v55  ;;  %v528_v59 = vmul.f32 %v525_v53, %v521_v57 }
 0x589   :  { %v949_v51 = vpop.xlane.xlu0 %948 }
 0x58a   :  { %v950_v52 = vmul.f32 0.00390625, %v949_v51 }
 0x58c   :  { %v951_v54 = vadd.f32 1e-05, %v950_v52 }
 0x58e   :  { %1056 = vrsqrt.f32 %v951_v54 }
 0x591   :  { %v532_v60 = vpop.permute.xlu0 %531 }
 0x592   :  { %v534_v61 = vadd.f32 %v532_v60, %v527_v58  ;;  %v535_v0 = vadd.f32 %v532_v60, %v528_v59 }
 0x594   :  { %v538_v62 = vcombine.low %v534_v61, %v535_v0 }
 0x596   :  { %v540_v5 = vadd.f32 %v1058_v63, %v538_v62 }
 0x598   :  { %v1057_v7 = vpop.eup %1056  ;;  %541 = vst [vmem:[#allocation2] sm:$0xff] %v540_v5 }
 0x599   :  { %v953_v8 = vmul.f32 %v1057_v7, %v941_v38  ;;  %v954_v10 = vmul.f32 %v1057_v7, %v942_v40 }
 0x59b   :  { %v955_v11 = vmul.f32 %v953_v8, %v525_v53  ;;  %v956_v12 = vmul.f32 %v954_v10, %v525_v53 }
 0x59d   :  { %v957_v41 = vadd.f32 %v955_v11, %v532_v60  ;;  %v958_v13 = vadd.f32 %v956_v12, %v532_v60 }
 0x59f   :  { %v961_v39 = vcombine.low %v957_v41, %v958_v13 }
 0x5a1   :  { %v963_v17 = vadd.f32 %v1059_v9, %v961_v39 }
 0x5a3   :  { %965 = vst [vmem:[#allocation2 + $0x8] sm:$0xff] %v963_v17 }
 0x5a4   :  { %1071 = shalt.err (!%p1068_p4)
}
 0x5a5   :  { %s1072_s28 = scalar_lea.hbm %s1649_s7, 256 }
 0x5a6   :  { %p1073_p5 = scmp.ne.s32.totalorder %s1649_s7, %s1072_s28  ;;  %p1076_p6 = scmp.lt.u32.totalorder %s1072_s28, %s1649_s7 }
 0x5a8   :  { %p1078_p7 = pnand %p1076_p6, %p1073_p5 }
 0x5aa   :  { %1081 = shalt.err (!%p1078_p7)
}
 0x5ab   :  { %s1095_s0 = smov 128   ;;  %s1096_s10 = smov 8  }
 0x5ac   :  { %977 = dma.vmem_to_hbm [thread:$0]  %s972_s22, 256, %s1649_s7, [#allocation3], %s1095_s0, %s1095_s0, %s1096_s10  }
 0x5ad   :  { %1082 = dma.done.wait [#allocation3], 256  }
 0x5ae   :  { %1083 = vsyncadd [#allocation3], 4294967040 }
 0x5af   :  { %981 = vsyncpa [#allocation3], 1 }

</bundles_post_ra>
